<compile_context>
chip_gen: v7x
topology: tpu7x:2x2x1
jax: 0.10.0
libtpu: 0.0.40
codegen_flags: <defaults>
</compile_context>

<pallas_src>
import jax
import jax.numpy as jnp
from jax.experimental import pallas as pl
from jax.experimental.pallas import tpu as pltpu

_LANES = 128


def _drop_path_kernel(scale_smem, x_ref, o_ref):
    # scale_smem: (B,) f32 in SMEM (scalar prefetch).
    # x_ref / o_ref: (1, tile_rows, 128) VMEM blocks of one sample.
    b = pl.program_id(1)                    # grid = (row_tiles, B)
    s = scale_smem[b]                       # per-sample scale = mask / keep_prob
    # Multiply in the activation dtype (bf16 stays bf16 on v6e/v7x; on v5e
    # Mosaic promotes to f32 since there is no bf16 VALU). Wall-clock is
    # HBM-bound either way.
    o_ref[...] = (x_ref[...] * s.astype(x_ref.dtype)).astype(o_ref.dtype)


def _pick_target_block_bytes():
    # 16 MiB blocks on 128-MiB-VMEM chips (v5e/v6e), 8 MiB on v7x (64 MiB VMEM).
    try:
        vmem_cap = getattr(pltpu.get_tpu_info(), "vmem_capacity_bytes",
                           64 * 1024 * 1024)
    except Exception:  # interpret mode / older jax — be conservative.
        vmem_cap = 64 * 1024 * 1024
    return 16 * 1024 * 1024 if vmem_cap >= 96 * 1024 * 1024 else 8 * 1024 * 1024


def drop_path_pallas(x, drop_prob=0.0, training=False, *, key=None,
                     donate_x=False, target_block_bytes=None):
    """DropPath forward. x: [B, ...] (e.g. NCHW). Returns same shape/dtype.

    donate_x: set True only when the caller donates x; adds
    input_output_aliases so the output reuses x's HBM buffer.
    """
    if drop_prob == 0.0 or not training:
        return x

    assert key is not None, "PRNG key required when training with drop_prob > 0"
    keep_prob = 1.0 - drop_prob

    B = x.shape[0]
    N = 1
    for d in x.shape[1:]:
        N *= d

    # Per-sample Bernoulli(keep_prob) mask exactly as torch:
    # floor(keep_prob + rand) drawn in x.dtype; the 1/keep_prob fold-in is f32.
    u = jax.random.uniform(key, (B,), dtype=x.dtype)
    mask = jnp.floor(jnp.asarray(keep_prob, x.dtype) + u)
    scale = mask.astype(jnp.float32) / jnp.float32(keep_prob)       # (B,) f32

    x_flat = x.reshape(B, N)                 # contiguous reshape: free

    rows = N // _LANES                       # full 128-lane rows per sample
    n_bulk = rows * _LANES

    if rows == 0:
        # Fewer than 128 features per sample: everything is "tail"; a single
        # fused XLA broadcast-multiply is already at roofline — no kernel.
        out = (x_flat * scale[:, None].astype(x.dtype)).astype(x.dtype)
        return out.reshape(x.shape)

    itemsize = jnp.dtype(x.dtype).itemsize
    # dtype-aware sublane granularity: f32 -> 8, bf16 -> 16, int8/fp8 -> 32,
    # so blocks stay vreg-exact and stores are unmasked full-width vst.
    sublane_mult = max(8, 32 // itemsize)

    if target_block_bytes is None:
        target_block_bytes = _pick_target_block_bytes()

    tile_rows = max(sublane_mult, target_block_bytes // (_LANES * itemsize))
    tile_rows -= tile_rows % sublane_mult
    if tile_rows >= rows:
        tile_rows = rows                     # full-extent block (always legal)

    block_bytes = tile_rows * _LANES * itemsize
    # Double-buffered in + out blocks plus headroom for Mosaic scratch.
    # Derived from the block size so v5e (16 MiB default scoped limit),
    # v6e (32 MiB) and v7x (64 MiB physical) are all handled by one code path.
    vmem_limit_bytes = 4 * block_bytes + 8 * 1024 * 1024

    x_bulk = x_flat if n_bulk == N else x_flat[:, :n_bulk]
    x3d = x_bulk.reshape(B, rows, _LANES)

    # Long row-tile axis first so the megacore split on v7x is byte-balanced.
    grid = (pl.cdiv(rows, tile_rows), B)

    out3d = pl.pallas_call(
        _drop_path_kernel,
        out_shape=jax.ShapeDtypeStruct((B, rows, _LANES), x.dtype),
        grid_spec=pltpu.PrefetchScalarGridSpec(
            num_scalar_prefetch=1,           # scale -> SMEM
            grid=grid,
            in_specs=[
                pl.BlockSpec((1, tile_rows, _LANES),
                             lambda r, b, scale: (b, r, 0)),
            ],
            out_specs=pl.BlockSpec((1, tile_rows, _LANES),
                                   lambda r, b, scale: (b, r, 0)),
        ),
        # Flat operand index 1 == x3d (index 0 is the scalar-prefetch scale).
        input_output_aliases={1: 0} if donate_x else {},
        compiler_params=pltpu.CompilerParams(
            dimension_semantics=("parallel", "parallel"),
            vmem_limit_bytes=vmem_limit_bytes,
        ),
    )(scale, x3d)

    if n_bulk == N:
        return out3d.reshape(x.shape)        # aligned hot path: zero copies

    # Ragged tail (< 128 elements per sample): scale it in plain JAX and
    # stitch. Only the tail epilogue + stitch pay extra traffic, never a full
    # padded copy of the tensor.
    tail = (x_flat[:, n_bulk:] * scale[:, None].astype(x.dtype)).astype(x.dtype)
    out_flat = jnp.concatenate([out3d.reshape(B, n_bulk), tail], axis=1)
    return out_flat.reshape(x.shape)


def _reference(x, drop_prob, key):
    keep_prob = 1.0 - drop_prob
    B = x.shape[0]
    u = jax.random.uniform(key, (B,), dtype=x.dtype)
    mask = jnp.floor(jnp.asarray(keep_prob, x.dtype) + u)
    mask = mask.reshape((B,) + (1,) * (x.ndim - 1))
    return x / keep_prob * mask


if __name__ == "__main__":
    key = jax.random.PRNGKey(0)
    kx, kmask, kx2, kmask2, kx3, kmask3, kx4, kmask4 = jax.random.split(key, 8)

    drop_prob = 0.3

    # --- main NCHW case: N = 4*16*16 = 1024 (aligned, zero-copy path) ---
    B, C, H, W = 2, 4, 16, 16
    x = jax.random.normal(kx, (B, C, H, W), dtype=jnp.float32)
    out = jax.block_until_ready(
        drop_path_pallas(x, drop_prob=drop_prob, training=True, key=kmask))
    ref = _reference(x, drop_prob, kmask)
    assert jnp.allclose(out, ref, rtol=1e-5, atol=1e-6), "mismatch vs reference"

    # --- donated-input variant on the aligned path (input_output_aliases) ---
    out_d = jax.block_until_ready(
        drop_path_pallas(x, drop_prob=drop_prob, training=True, key=kmask,
                         donate_x=True))
    assert jnp.allclose(out_d, ref, rtol=1e-5, atol=1e-6), "donate mismatch"

    # --- tiny ragged case: N = 105 < 128 -> pure JAX tail path ---
    x2 = jax.random.normal(kx2, (2, 3, 5, 7), dtype=jnp.float32)
    out2 = jax.block_until_ready(
        drop_path_pallas(x2, drop_prob=drop_prob, training=True, key=kmask2))
    ref2 = _reference(x2, drop_prob, kmask2)
    assert jnp.allclose(out2, ref2, rtol=1e-5, atol=1e-6), "tiny ragged mismatch"

    # --- ragged with bulk + tail: N = 4*16*17 = 1088 = 8*128 + 64 ---
    x3 = jax.random.normal(kx3, (2, 4, 16, 17), dtype=jnp.float32)
    out3 = jax.block_until_ready(
        drop_path_pallas(x3, drop_prob=drop_prob, training=True, key=kmask3))
    ref3 = _reference(x3, drop_prob, kmask3)
    assert jnp.allclose(out3, ref3, rtol=1e-5, atol=1e-6), "bulk+tail mismatch"

    # --- bf16 (exercises dtype-aware sublane sizing + in-dtype multiply) ---
    x4 = jax.random.normal(kx4, (2, 4, 16, 16), dtype=jnp.bfloat16)
    out4 = jax.block_until_ready(
        drop_path_pallas(x4, drop_prob=drop_prob, training=True, key=kmask4))
    ref4 = _reference(x4, drop_prob, kmask4)
    assert jnp.allclose(out4.astype(jnp.float32), ref4.astype(jnp.float32),
                        rtol=5e-2, atol=1e-2), "bf16 mismatch"

    # --- eval mode / drop_prob=0 are identity ---
    out_eval = drop_path_pallas(x, drop_prob=drop_prob, training=False)
    assert jnp.array_equal(out_eval, x)
    out_p0 = drop_path_pallas(x, drop_prob=0.0, training=True, key=kmask)
    assert jnp.array_equal(out_p0, x)

    print("KERNEL_OK")
</pallas_src>

<mosaic_0001>
module attributes {stable_mosaic.version = 11 : i64} {
  func.func @_drop_path_kernel(%arg0: i32, %arg1: i32, %arg2: memref<2xf32, #tpu.memory_space<smem>>, %arg3: memref<1x8x128xf32, #tpu.memory_space<vmem>>, %arg4: memref<1x8x128xf32, #tpu.memory_space<vmem>>) attributes {dimension_semantics = [#tpu.dimension_semantics<parallel>, #tpu.dimension_semantics<parallel>], iteration_bounds = array<i64: 1, 2>, scalar_prefetch = 1 : i64, scratch_operands = 0 : i64, tpu.core_type = #tpu.core_type<tc>, window_params = [{transform_indices = @transform_0, window_bounds = array<i64: 1, 8, 128>}, {transform_indices = @transform_1, window_bounds = array<i64: 1, 8, 128>}]} {
    %0 = arith.index_cast %arg1 : i32 to index
    %1 = memref.load %arg2[%0] : memref<2xf32, #tpu.memory_space<smem>>
    %c0 = arith.constant 0 : index
    %c0_0 = arith.constant 0 : index
    %c0_1 = arith.constant 0 : index
    %2 = vector.load %arg3[%c0, %c0_0, %c0_1] : memref<1x8x128xf32, #tpu.memory_space<vmem>>, vector<1x8x128xf32>
    %3 = vector.broadcast %1 : f32 to vector<1x8x128xf32>
    %4 = arith.mulf %2, %3 : vector<1x8x128xf32>
    %c0_2 = arith.constant 0 : index
    %c0_3 = arith.constant 0 : index
    %c0_4 = arith.constant 0 : index
    %5 = vector.load %arg4[%c0_2, %c0_3, %c0_4] : memref<1x8x128xf32, #tpu.memory_space<vmem>>, vector<1x8x128xf32>
    tpu.vector_store %arg4[%c0_2, %c0_3, %c0_4], %4 {strides = array<i32>} : memref<1x8x128xf32, #tpu.memory_space<vmem>>, vector<1x8x128xf32>,
    return
  }
  func.func @transform_0(%arg0: i32, %arg1: i32, %arg2: memref<2xf32, #tpu.memory_space<smem>>) -> (i32, i32, i32) {
    %c0_i32 = arith.constant 0 : i32
    %c0_i32_0 = arith.constant 0 : i32
    return %arg1, %arg0, %c0_i32 : i32, i32, i32
  }
  func.func @transform_1(%arg0: i32, %arg1: i32, %arg2: memref<2xf32, #tpu.memory_space<smem>>) -> (i32, i32, i32) {
    %c0_i32 = arith.constant 0 : i32
    %c0_i32_0 = arith.constant 0 : i32
    return %arg1, %arg0, %c0_i32 : i32, i32, i32
  }
}

</mosaic_0001>

<bundles_post_ra>
// kernel: tpu_custom_call.1
= control target key start
LH: loop header
LB: loop body
LE: loop exit
PB: predicated region body
PF: predicated region fallthrough
CT: control target
= control target key end

     0   :  { %s659_s0 = inlined_call_operand.hbm [shape: f32[2], index: 0, kind: input, shape index: {}]   ;;  %s660_s1 = inlined_call_operand.hbm [shape: f32[2,8,128], index: 1, kind: input, shape index: {}]   ;;  %s661_s2 = inlined_call_operand.hbm [shape: f32[2,8,128], index: 2, kind: output, shape index: {}]  }
   0x1   :  { %s330_s11 = scalar_lea.hbm %s659_s0, 16 }
   0x2   :  { %p331_p0 = scmp.ne.s32.totalorder %s659_s0, %s330_s11  ;;  %p334_p1 = scmp.lt.u32.totalorder %s330_s11, %s659_s0 }
   0x4   :  { %p336_p2 = pnand %p334_p1, %p331_p0 }
   0x6   :  { %339 = shalt.err (!%p336_p2)  }
   0x7   :  { %s456_s16 = smov [#allocation3]  }
   0x8   :  { %8 = dma.hbm_to_smem %s659_s0, 16, %s456_s16, [#allocation2] }
   0x9   :  { %422 = dma.done.wait [#allocation2], 16 }
   0xa   :  { %423 = vsyncadd [#allocation2], 4294967280 }
   0xb   :  { %10 = sfence }
   0xc   :  { %11 = vsyncpa [#allocation5], 0 }
   0xd   :  { %13 = vsyncpa [#allocation5 + $0x1], 0 }
   0xe   :  { %14 = vsyncpa [#allocation6], 0 }
   0xf   :  { %16 = vsyncpa [#allocation6 + $0x1], 0  ;;  %s486_s19 = smov 0   ;;  %s488_s20 = smov 0  }
  0x10   :  { %s490_s21 = smov 0   ;;  %s492_s22 = smov 0  }
  0x11   :  { %s494_s23 = smov 0   ;;  %s496_s24 = smov 0  }
  0x12 LB: > { %s254_s0 = sadd.s32 4294967295, %s454_s24   ;;  %s255_s25 = sadd.s32 4294967294, %s454_s24   ;;  %s454_s24 = sphi %s496_s24, %s22_s24   ;;  %s450_s23 = sphi %s494_s23, %s677_s23   ;;  %s446_s22 = sphi %s492_s22, %s676_s22   ;;  %s442_s21 = sphi %s490_s21, %s675_s21   ;;  %s438_s20 = sphi %s488_s20, %s674_s20   ;;  %s434_s19 = sphi %s486_s19, %s673_s19  }
  0x13   : > { %s31_s26 = sadd.s32 1, %s450_s23  ;;  %s43_s27 = sadd.s32 1, %s442_s21 }
  0x14   : > { %p32_p3 = scmp.ge.s32.totalorder %s31_s26, 2  ;;  %p50_p4 = scmp.ne.s32.totalorder %s442_s21, %s438_s20 }
  0x15   : > { %p51_p5 = scmp.eq.s32.totalorder %s454_s24, 0  ;;  %p56_p6 = scmp.ne.s32.totalorder %s438_s20, %s434_s19 }
  0x16   : > { %s679_s26 = smov (%p32_p3, %s31_s26), 0  ;;  %p57_p8 = scmp.eq.s32.totalorder %s254_s0, 0 }
  0x17   : > { %p527_p7 = por %p51_p5, %p50_p4  ;;  %s38_s29 = ssub.s32 %s450_s23, %s679_s26 }
  0x18   : > { %p82_p9 = scmp.eq.s32.totalorder %s254_s0, 1  ;;  %p41_p10 = scmp.eq.s32.totalorder %s38_s29, 0 }
  0x19   : > { %p533_p11 = por %p57_p8, %p56_p6  ;;  %p88_p13 = scmp.eq.s32.totalorder %s255_s25, 1 }
  0x1a   : > { %p537_p12 = por %p82_p9, %p50_p4  ;;  %p279_p2 = scmp.lt.s32.totalorder %s454_s24, 2 }
  0x1b   : > { %s542_s4 = scalar_select %p41_p10, %s442_s21, %s43_s27  }
  0x1c   : > { %s665_s3 = scalar_select %p537_p12, 1, 0 }
  0x1d   : > { %p544_p0 = por %p88_p13, %p56_p6  ;;  %s108_s6 = sand.u32 1, %s442_s21  }
  0x1e   : > { %s258_s7 = sshll.u32 %s108_s6, 3  ;;  %s259_s8 = sshll.u32 %s450_s23, 7 }
  0x1f   : > { %s666_s5 = scalar_select %p544_p0, 1, 0 }
  0x20   : > { %s555_s11 = scalar_lea.hbm %s660_s1, %s259_s8  ;;  %s112_s12 = scalar_lea.vmem [#allocation4], %s258_s7 }
  0x21   : > { %s120_s13 = sshll.u32 %s112_s12, 4  ;;  %p561_p3 = pnand %p279_p2, %p527_p7  ;;  %s557_s13 = int_to_ptr.vmem [resolvable:$true] %s120_s13 }
  0x22   : > { %s109_s15 = scalar_lea.sflag [#allocation5], %s108_s6  ;;  %s340_s16 = scalar_lea.hbm %s555_s11, 128 }
  0x23   : > { %p341_p6 = scmp.ne.s32.totalorder %s555_s11, %s340_s16  ;;  %p342_p8 = pneg %p561_p3 }
  0x24   : > { %s345_s0 = scalar_lea.hbm %s660_s1, 256  ;;  %p346_p7 = scmp.lt.u32.totalorder %s555_s11, %s660_s1 }
  0x25   : > { %p343_p9 = pnand %p342_p8, %p341_p6  ;;  %p347_p13 = scmp.lt.u32.totalorder %s345_s0, %s340_s16 }
  0x26   : > { %p349_p1 = scmp.lt.u32.totalorder %s340_s16, %s555_s11 }
  0x27   : > { %p344_p10 = pneg %p343_p9  ;;  %p348_p2 = por %p347_p13, %p346_p7 }
  0x29   : > { %p350_p4 = por %p349_p1, %p348_p2 }
  0x2b   : > { %p351_p5 = pnand %p350_p4, %p344_p10 }
  0x2d   : > { %354 = shalt.err (!%p351_p5)
}
  0x2e   : > { %s355_s28 = scalar_lea.vmem %s557_s13, 128  ;;  %s457_s29 = smov [#allocation4]  }
  0x2f   : > { %p356_p6 = scmp.ne.s32.totalorder %s557_s13, %s355_s28  ;;  %s360_s6 = sshll.u32 %s457_s29, 4  ;;  %s361_s6 = int_to_ptr.vmem [resolvable:$false] %s360_s6 }
  0x30   : > { %s362_s7 = scalar_lea.vmem %s361_s6, 256  ;;  %p363_p12 = scmp.lt.s32.totalorder %s557_s13, %s361_s6 }
  0x31   : > { %p358_p9 = pnand %p356_p6, %p342_p8  ;;  %p364_p7 = scmp.lt.s32.totalorder %s362_s7, %s355_s28 }
  0x33   : > { %p359_p0 = pneg %p358_p9  ;;  %p365_p13 = por %p364_p7, %p363_p12 }
  0x35   : > { %p366_p1 = pnand %p365_p13, %p359_p0 }
  0x37   : > { %369 = shalt.err (!%p366_p1)
}
  0x38   : > { %274 = dma.hbm_to_vmem [thread:$0]  (!%p561_p3), %s555_s11, 128, %s557_s13, %s109_s15  }
  0x39   : > { %p668_p4 = scmp.lt.s32.totalorder %s454_s24, 3  ;;  %p669_p5 = scmp.ge.s32.totalorder %s454_s24, 1 }
  0x3b   : > { %p126_p8 = pnand %p669_p5, %p668_p4 }
  0x3c   : > { %s597_s8 = sand.u32 (!%p126_p8), 1, %s438_s20  }
  0x3d   : > { %129 = sbr.rel (%p126_p8) target bundleno = 95 (0x5f), region = 24  ;;  %s261_s9 = sshll.u32 (!%p126_p8), %s597_s8, 3 }
  0x3e   : > { %s132_s10 = scalar_lea.sflag (!%p126_p8), [#allocation5], %s597_s8  ;;  %s135_s12 = scalar_lea.vmem (!%p126_p8), [#allocation4], %s261_s9 }
  0x44   : > { %425 = dma.done.wait (%p533_p11), %s132_s10, 128  }
  0x45   : > { %427 = vsyncadd (%p533_p11), %s132_s10, 4294967168  ;;  %s154_s11 = sld [smem:[#allocation3 + %s446_s22]]  ;;  %s153_s13 = scalar_lea.vmem [#allocation7], %s261_s9  ;;  %v155_v0 = vld [vmem:[%s135_s12] sm:$0xff] }
  0x46   : > { %s174_s14 = sshll.u32 %s153_s13, 4  ;;  %s264_s15 = sshll.u32 %s446_s22, 7  ;;  %s607_s14 = int_to_ptr.vmem [resolvable:$true] %s174_s14 }
  0x47   : > { %s612_s30 = scalar_lea.hbm %s661_s2, %s264_s15  ;;  %s160_s18 = scalar_lea.sflag [#allocation6], %s597_s8 }
  0x48   : > { %s370_s0 = scalar_lea.vmem %s607_s14, 128  ;;  %p670_p12 = scmp.ne.s32.totalorder %s665_s3, 0 }
  0x49   : > { %p371_p11 = scmp.ne.s32.totalorder %s607_s14, %s370_s0  ;;  %s458_s22 = smov [#allocation7]  }
  0x4a   : > { %s374_s25 = sshll.u32 %s458_s22, 4  ;;  %s375_s25 = int_to_ptr.vmem [resolvable:$false] %s374_s25 }
  0x4b   : > { %v156_v1 = vstv %s154_s11  ;;  %p372_p0 = pnand %p371_p11, %p670_p12  ;;  %s376_s27 = scalar_lea.vmem %s375_s25, 256 }
  0x4c   : > { %v157_v2 = vmul.f32 %v156_v1, %v155_v0  ;;  %p377_p10 = scmp.lt.s32.totalorder %s607_s14, %s375_s25  ;;  %p378_p2 = scmp.lt.s32.totalorder %s376_s27, %s370_s0 }
  0x4d   : > { %p373_p3 = pneg %p372_p0 }
  0x4e   : > { %158 = vst [vmem:[%s153_s13] sm:$0xff] %v157_v2  ;;  %p379_p6 = por %p378_p2, %p377_p10 }
  0x50   : > { %p380_p9 = pnand %p379_p6, %p373_p3 }
  0x52   : > { %383 = shalt.err (!%p380_p9)
}
  0x53   : > { %s384_s28 = scalar_lea.hbm %s612_s30, 128  ;;  %s388_s7 = scalar_lea.hbm %s661_s2, 256 }
  0x54   : > { %p385_p7 = scmp.ne.s32.totalorder %s612_s30, %s384_s28  ;;  %p389_p4 = scmp.lt.u32.totalorder %s612_s30, %s661_s2 }
  0x55   : > { %p390_p5 = scmp.lt.u32.totalorder %s388_s7, %s384_s28  ;;  %p392_p11 = scmp.lt.u32.totalorder %s384_s28, %s612_s30 }
  0x56   : > { %p386_p13 = pnand %p385_p7, %p670_p12 }
  0x57   : > { %p391_p8 = por %p390_p5, %p389_p4 }
  0x58   : > { %p387_p1 = pneg %p386_p13 }
  0x59   : > { %p393_p0 = por %p392_p11, %p391_p8 }
  0x5b   : > { %p394_p3 = pnand %p393_p0, %p387_p1 }
  0x5d   : > { %397 = shalt.err (!%p394_p3)
}
  0x5e   : > { %269 = dma.vmem_to_hbm [thread:$0]  (%p670_p12), %s607_s14, 128, %s612_s30, %s160_s18  }
  0x5f PF: > { %s186_s10 = sand.u32 1, %s434_s19   ;;  %p671_p10 = scmp.ne.s32.totalorder %s666_s5, 0 }
  0x60   : > { %p672_p2 = scmp.ge.s32.totalorder %s454_s24, 2  ;;  %s187_s12 = scalar_lea.sflag [#allocation6], %s186_s10 }
  0x62   : > { %p276_p6 = pnand %p672_p2, %p671_p10 }
  0x64   : > { %429 = dma.done.wait (!%p276_p6), %s187_s12, 128  }
  0x65   : > { %431 = vsyncadd (!%p276_p6), %s187_s12, 4294967168  ;;  %s22_s24 = sadd.s32 1, %s454_s24   ;;  %s673_s19 = smov %s438_s20 }
  0x66   : > { %p19_p9 = scmp.ge.s32.totalorder %s22_s24, 4   ;;  %s674_s20 = smov %s442_s21 }
  0x67   : > { %s675_s21 = smov %s542_s4  ;;  %s676_s22 = smov %s450_s23 }
  0x68   : > { %s677_s23 = smov %s679_s26  ;;  %21 = sbr.rel (!%p19_p9) target bundleno = 18 (0x12), region = 69 }
  0x6f   :  { %192 = vsyncpa [#allocation5], 1 }
  0x70   :  { %194 = vsyncpa [#allocation5 + $0x1], 1 }
  0x71   :  { %195 = vsyncpa [#allocation6], 1 }
  0x72   :  { %197 = vsyncpa [#allocation6 + $0x1], 1 }

</bundles_post_ra>
